<compile_context>
chip_gen: v6e
topology: v6e:2x2x1
jax: 0.10.0
libtpu: 0.0.40
codegen_flags: <defaults>
</compile_context>

<pallas_src>
import functools

import jax
import jax.numpy as jnp
from jax import lax
from jax.experimental import pallas as pl
from jax.experimental.pallas import tpu as pltpu


def _round_up(x, m):
    return ((x + m - 1) // m) * m


def _ml2ce_kernel(y_pred_ref, y_true_ref, out_ref, *, from_logits: bool,
                  n_total: int, block_rows: int):
    # Cast inside the kernel (inputs may arrive as bf16 / int8 / bool in HBM).
    y_pred = y_pred_ref[...].astype(jnp.float32)      # (TN, C)
    y_true = y_true_ref[...]                          # (TN, K), native dtype

    tn, c = y_pred.shape
    k = y_true.shape[1]

    # Class iota for the gather mask (values 0..C-1 on lanes).
    cls = lax.broadcasted_iota(jnp.int32, (tn, c), 1)                 # (TN, C)
    # Label-column iota for the first-positive reduction.
    col = lax.broadcasted_iota(jnp.int32, (tn, k), 1)                 # (TN, K)

    # y_true is 0/1 multi-hot: first positive column j -> class j + 1;
    # a row with no positives -> class 0.  Single min-reduction (no separate
    # max + argmax passes).
    pos = y_true if y_true.dtype == jnp.bool_ else (y_true > 0)
    first = jnp.min(jnp.where(pos, col, k), axis=1, keepdims=True)    # (TN, 1)
    gt = jnp.where(first == k, 0, first + 1)                          # (TN, 1)

    # Mask rows past the end of the array (ragged last tile).
    row = (pl.program_id(0) * block_rows
           + lax.broadcasted_iota(jnp.int32, (tn, 1), 0))
    valid = row < n_total                                             # (TN, 1)

    pick = (cls == gt) & valid                                        # (TN, C)

    if from_logits:
        # Fused log-softmax + gather: never materialize full log-probs.
        row_max = jnp.max(y_pred, axis=1, keepdims=True)              # (TN, 1)
        shifted = y_pred - row_max
        lse = jnp.log(jnp.sum(jnp.exp(shifted), axis=1, keepdims=True))
        # Exactly one pick per valid row -> gather on raw y_pred and subtract
        # row_max on the narrow (TN,1) result instead of re-masking `shifted`
        # (saves one full (TN,C) select pass).
        picked = jnp.sum(jnp.where(pick, y_pred, 0.0), axis=1,
                         keepdims=True) - row_max                     # (TN, 1)
        # Keep select-based masking: stale rows in the padded last tile may
        # carry NaN/Inf through exp/log; jnp.where drops them safely.
        tile_sum = jnp.sum(jnp.where(valid, picked - lse, 0.0))
    else:
        # NLLLoss path: y_pred already holds log-probabilities.
        tile_sum = jnp.sum(jnp.where(pick, y_pred, 0.0))

    # Lane-dense per-tile partial sum (wrapper reads out[i, 0, 0]).
    out_ref[...] = jnp.full(out_ref.shape, -tile_sum, dtype=jnp.float32)


def _vmem_budgets():
    """Return (input_buffer_budget_bytes, vmem_limit_bytes) per generation."""
    kind = ""
    try:
        kind = jax.devices()[0].device_kind.lower()
    except Exception:
        pass
    if ("v5" in kind) or ("v6" in kind):
        # 128 MiB physical VMEM: ~48 MiB of pipeline buffers is safe.
        return 48 * 1024 * 1024, 64 * 1024 * 1024
    # v7x (64 MiB physical per TensorCore) or unknown: stay conservative.
    return 24 * 1024 * 1024, 32 * 1024 * 1024


def _choose_block_rows(n, c, k, pred_itemsize, true_itemsize, buf_budget):
    # VMEM footprint uses the PADDED layout: lanes round up to 128 regardless
    # of C/K, and each input tile is double-buffered by the BlockSpec
    # pipeline.  (Sublane rounding is negligible at these row counts.)
    lane_c = _round_up(c, 128)
    lane_k = _round_up(k, 128)
    per_row = 2 * (lane_c * pred_itemsize + lane_k * true_itemsize)
    tn = buf_budget // max(per_row, 1)
    tn = max(8, (tn // 8) * 8)       # sublane-aligned
    return n if n <= tn else tn      # block dim == full array dim is legal


def multilabel_to_cross_entropy_loss(y_pred, y_true, from_logits: bool = False,
                                     block_rows=None):
    """y_pred: (N, C) (log-probs if from_logits=False, raw logits otherwise).
    y_true: (N, K) 0/1 multi-hot (f32/bf16/int8/bool), K = C - 1.
    Returns scalar float32 loss."""
    n, c = y_pred.shape
    n2, k = y_true.shape
    assert n2 == n, "y_pred / y_true batch mismatch"
    assert k == c - 1, "y_true must have C - 1 label columns"

    pred_itemsize = jnp.dtype(y_pred.dtype).itemsize
    true_itemsize = jnp.dtype(y_true.dtype).itemsize
    buf_budget, vmem_limit = _vmem_budgets()

    if block_rows is None:
        block_rows = _choose_block_rows(
            n, c, k, pred_itemsize, true_itemsize, buf_budget)
    num_tiles = pl.cdiv(n, block_rows)

    bytes_accessed = (n * c * pred_itemsize + n * k * true_itemsize
                      + num_tiles * 8 * 128 * 4)
    cost = pl.CostEstimate(
        flops=int(4 * n * (c + k)),
        transcendentals=int(n * (c + 1)) if from_logits else 0,
        bytes_accessed=int(bytes_accessed))

    kernel = functools.partial(_ml2ce_kernel, from_logits=from_logits,
                               n_total=n, block_rows=block_rows)
    partial = pl.pallas_call(
        kernel,
        out_shape=jax.ShapeDtypeStruct((num_tiles, 8, 128), jnp.float32),
        grid=(num_tiles,),
        in_specs=[
            pl.BlockSpec((block_rows, c), lambda i: (i, 0)),
            pl.BlockSpec((block_rows, k), lambda i: (i, 0)),
        ],
        out_specs=pl.BlockSpec((1, 8, 128), lambda i: (i, 0, 0)),
        compiler_params=pltpu.CompilerParams(
            dimension_semantics=("parallel",),
            vmem_limit_bytes=vmem_limit),
        cost_estimate=cost,
    )(y_pred, y_true)

    return jnp.sum(partial[:, 0, 0]) / jnp.float32(n)


def _reference(y_pred, y_true, from_logits=False):
    y_true = y_true.astype(jnp.float32)
    max_val = jnp.max(y_true, axis=1)
    argmax = jnp.argmax(y_true, axis=1)
    gt = jnp.where(max_val == 0, 0, argmax + 1)
    logp = jax.nn.log_softmax(y_pred, axis=1) if from_logits else y_pred
    return -jnp.mean(logp[jnp.arange(y_pred.shape[0]), gt])


if __name__ == "__main__":
    key = jax.random.PRNGKey(0)
    k1, k2, k3, k4 = jax.random.split(key, 4)

    N, K = 8, 7
    C = K + 1  # class 0 reserved for "no positive label"

    # --- default path (NLLLoss on log-probabilities), single auto-sized tile ---
    logits = jax.random.normal(k1, (N, C), dtype=jnp.float32)
    y_pred = jax.nn.log_softmax(logits, axis=1)
    y_true = (jax.random.uniform(k2, (N, K)) > 0.6).astype(jnp.float32)
    y_true = y_true.at[0].set(0.0)   # exercise the gt = 0 ("no label") path

    loss = multilabel_to_cross_entropy_loss(y_pred, y_true, from_logits=False)
    jax.block_until_ready(loss)
    ref = _reference(y_pred, y_true, from_logits=False)
    assert jnp.allclose(loss, ref, atol=1e-5, rtol=1e-5), (loss, ref)

    # --- from_logits=True, int8 labels (native-dtype stream), ragged grid ---
    N2 = 20
    logits2 = jax.random.normal(k3, (N2, C), dtype=jnp.float32)
    y_true2 = (jax.random.uniform(k4, (N2, K)) > 0.5).astype(jnp.int8)
    y_true2 = y_true2.at[3].set(0)

    loss2 = multilabel_to_cross_entropy_loss(
        logits2, y_true2, from_logits=True, block_rows=8)
    jax.block_until_ready(loss2)
    ref2 = _reference(logits2, y_true2, from_logits=True)
    assert jnp.allclose(loss2, ref2, atol=1e-5, rtol=1e-5), (loss2, ref2)

    print("KERNEL_OK")
</pallas_src>

<mosaic_0001>
module attributes {stable_mosaic.version = 11 : i64} {
  func.func @_ml2ce_kernel(%arg0: i32, %arg1: memref<8x8xf32, #tpu.memory_space<vmem>>, %arg2: memref<8x7xf32, #tpu.memory_space<vmem>>, %arg3: memref<1x8x128xf32, #tpu.memory_space<vmem>>) attributes {dimension_semantics = [#tpu.dimension_semantics<parallel>], iteration_bounds = array<i64: 1>, scalar_prefetch = 0 : i64, scratch_operands = 0 : i64, tpu.core_type = #tpu.core_type<tc>, window_params = [{transform_indices = @transform_0, window_bounds = array<i64: 8, 8>}, {transform_indices = @transform_1, window_bounds = array<i64: 8, 7>}, {transform_indices = @transform_2, window_bounds = array<i64: 1, 8, 128>}]} {
    %c0 = arith.constant 0 : index
    %c0_0 = arith.constant 0 : index
    %0 = vector.load %arg1[%c0, %c0_0] : memref<8x8xf32, #tpu.memory_space<vmem>>, vector<8x8xf32>
    %c0_1 = arith.constant 0 : index
    %c0_2 = arith.constant 0 : index
    %1 = vector.load %arg2[%c0_1, %c0_2] : memref<8x7xf32, #tpu.memory_space<vmem>>, vector<8x7xf32>
    %2 = tpu.iota {dimensions = array<i32: 1>} : vector<8x8xi32>
    %3 = tpu.iota {dimensions = array<i32: 1>} : vector<8x7xi32>
    %cst = arith.constant 0.000000e+00 : f32
    %4 = vector.broadcast %cst : f32 to vector<8x7xf32>
    %5 = arith.cmpf ogt, %1, %4 : vector<8x7xf32>
    %c7_i32 = arith.constant 7 : i32
    %6 = vector.broadcast %c7_i32 : i32 to vector<8x7xi32>
    %7 = arith.select %5, %3, %6 : vector<8x7xi1>, vector<8x7xi32>
    %cst_3 = arith.constant dense<2147483647> : vector<8xi32>
    %8 = vector.multi_reduction <minsi>, %7, %cst_3 [1] : vector<8x7xi32> to vector<8xi32>
    %9 = vector.shape_cast %8 : vector<8xi32> to vector<8x1xi32>
    %c7_i32_4 = arith.constant 7 : i32
    %10 = vector.broadcast %c7_i32_4 : i32 to vector<8x1xi32>
    %11 = arith.cmpi eq, %9, %10 : vector<8x1xi32>
    %c1_i32 = arith.constant 1 : i32
    %12 = vector.broadcast %c1_i32 : i32 to vector<8x1xi32>
    %13 = arith.addi %9, %12 : vector<8x1xi32>
    %c0_i32 = arith.constant 0 : i32
    %14 = vector.broadcast %c0_i32 : i32 to vector<8x1xi32>
    %15 = arith.select %11, %14, %13 : vector<8x1xi1>, vector<8x1xi32>
    %c8_i32 = arith.constant 8 : i32
    %16 = arith.muli %arg0, %c8_i32 : i32
    %17 = tpu.iota {dimensions = array<i32: 0>} : vector<8x1xi32>
    %18 = vector.broadcast %16 : i32 to vector<8x1xi32>
    %19 = arith.addi %18, %17 : vector<8x1xi32>
    %c8_i32_5 = arith.constant 8 : i32
    %20 = vector.broadcast %c8_i32_5 : i32 to vector<8x1xi32>
    %21 = arith.cmpi slt, %19, %20 : vector<8x1xi32>
    %22 = vector.broadcast %15 : vector<8x1xi32> to vector<8x8xi32>
    %23 = arith.cmpi eq, %2, %22 : vector<8x8xi32>
    %24 = vector.broadcast %21 : vector<8x1xi1> to vector<8x8xi1>
    %25 = arith.andi %23, %24 : vector<8x8xi1>
    %cst_6 = arith.constant 0.000000e+00 : f32
    %26 = vector.broadcast %cst_6 : f32 to vector<8x8xf32>
    %27 = arith.select %25, %0, %26 : vector<8x8xi1>, vector<8x8xf32>
    %28 = vector.shape_cast %27 : vector<8x8xf32> to vector<1x8x8xf32>
    %cst_7 = arith.constant dense<0.000000e+00> : vector<1xf32>
    %29 = vector.multi_reduction <add>, %28, %cst_7 [1, 2] : vector<1x8x8xf32> to vector<1xf32>
    %30 = vector.shape_cast %29 : vector<1xf32> to vector<1x1x1xf32>
    %31 = vector.extract %30[0, 0, 0] : f32 from vector<1x1x1xf32>
    %cst_8 = arith.constant 0.000000e+00 : f32
    %32 = arith.subf %cst_8, %31 : f32
    %33 = vector.broadcast %32 : f32 to vector<1x8x128xf32>
    %c0_9 = arith.constant 0 : index
    %c0_10 = arith.constant 0 : index
    %c0_11 = arith.constant 0 : index
    %34 = vector.load %arg3[%c0_9, %c0_10, %c0_11] : memref<1x8x128xf32, #tpu.memory_space<vmem>>, vector<1x8x128xf32>
    tpu.vector_store %arg3[%c0_9, %c0_10, %c0_11], %33 {strides = array<i32>} : memref<1x8x128xf32, #tpu.memory_space<vmem>>, vector<1x8x128xf32>,
    return
  }
  func.func @transform_0(%arg0: i32) -> (i32, i32) {
    %c0_i32 = arith.constant 0 : i32
    %c0_i32_0 = arith.constant 0 : i32
    return %arg0, %c0_i32 : i32, i32
  }
  func.func @transform_1(%arg0: i32) -> (i32, i32) {
    %c0_i32 = arith.constant 0 : i32
    %c0_i32_0 = arith.constant 0 : i32
    return %arg0, %c0_i32 : i32, i32
  }
  func.func @transform_2(%arg0: i32) -> (i32, i32, i32) {
    %c0_i32 = arith.constant 0 : i32
    %c0_i32_0 = arith.constant 0 : i32
    %c0_i32_1 = arith.constant 0 : i32
    return %arg0, %c0_i32, %c0_i32_0 : i32, i32, i32
  }
}

</mosaic_0001>

<bundles_post_ra>
// kernel: tpu_custom_call.1
= control target key start
LH: loop header
LB: loop body
LE: loop exit
PB: predicated region body
PF: predicated region fallthrough
CT: control target
= control target key end

     0   :  { %7 = vsyncpa [#allocation3], 0  ;;  %s200_s0 = inlined_call_operand.hbm [shape: f32[8,8], index: 0, kind: input, shape index: {}]   ;;  %s201_s1 = inlined_call_operand.hbm [shape: f32[8,7], index: 1, kind: input, shape index: {}]   ;;  %s202_s2 = inlined_call_operand.hbm [shape: f32[1,8,128], index: 2, kind: output, shape index: {}]  }
   0x1   :  { %8 = vsyncpa [#allocation6], 0 }
   0x2   :  { %9 = vsyncpa [#allocation4], 0  ;;  %s173_s9 = smov [#allocation2]   ;;  %s174_s11 = smov [#allocation5]  }
   0x3   :  { %s16_s10 = sshll.u32 %s173_s9, 4  ;;  %s26_s12 = sshll.u32 %s174_s11, 4  ;;  %s17_s10 = int_to_ptr.vmem [resolvable:$true] %s16_s10  ;;  %s27_s12 = int_to_ptr.vmem [resolvable:$true] %s26_s12 }
   0x4   :  { %s115_s13 = scalar_lea.vmem %s17_s10, 128  ;;  %p120_p1 = scmp.lt.s32.totalorder %s17_s10, %s17_s10 }
   0x5   :  { %p116_p0 = scmp.ne.s32.totalorder %s17_s10, %s115_s13  ;;  %p121_p2 = scmp.lt.s32.totalorder %s115_s13, %s115_s13 }
   0x7   :  { %p122_p3 = por %p121_p2, %p120_p1 }
   0x9   :  { %p123_p4 = pnand %p122_p3, %p116_p0 }
   0xb   :  { %126 = shalt.err (!%p123_p4)
}
   0xc   :  { %19 = dma.hbm_to_vmem [thread:$0]  %s200_s0, 128, %s17_s10, [#allocation3]  }
   0xd   :  { %s135_s16 = scalar_lea.vmem %s27_s12, 128  ;;  %p140_p6 = scmp.lt.s32.totalorder %s27_s12, %s27_s12 }
   0xe   :  { %p136_p5 = scmp.ne.s32.totalorder %s27_s12, %s135_s16  ;;  %p141_p7 = scmp.lt.s32.totalorder %s135_s16, %s135_s16 }
  0x10   :  { %p142_p8 = por %p141_p7, %p140_p6 }
  0x12   :  { %p143_p9 = pnand %p142_p8, %p136_p5 }
  0x14   :  { %146 = shalt.err (!%p143_p9)
}
  0x15   :  { %29 = dma.hbm_to_vmem [thread:$0]  %s201_s1, 128, %s27_s12, [#allocation6]  }
  0x16   :  { %167 = dma.done.wait [#allocation3], 128  }
  0x17   :  { %168 = vsyncadd [#allocation3], 4294967168 }
  0x18   :  { %169 = dma.done.wait [#allocation6], 128  }
  0x19   :  { %170 = vsyncadd [#allocation6], 4294967168  ;;  %v38_v0 = vlaneseq  ;;  %v37_v2 = vld [vmem:[#allocation5] sm:$0xff]  ;;  %vm42_vm0 = vcmask 56320   ;;  %v36_v17 = vld [vmem:[#allocation2] sm:$0xff]  ;;  %vm72_vm4 = vcmask 64512  }
  0x1a   :  { %vm40_vm1 = vcmp.gt.f32.partialorder %v37_v2, 0.0  ;;  %s175_s0 = smov [#allocation7]  }
  0x1b   :  { %v39_v1 = vand.u32 127, %v38_v0  ;;  %s92_s1 = sshll.u32 %s175_s0, 4  ;;  %s93_s1 = int_to_ptr.vmem [resolvable:$true] %s92_s1 }
  0x1c   :  { %s147_s21 = scalar_lea.vmem %s93_s1, 128  ;;  %p152_p11 = scmp.lt.s32.totalorder %s93_s1, %s93_s1 }
  0x1d   :  { %v41_v3 = vsel %vm40_vm1, %v39_v1, 7  ;;  %p148_p10 = scmp.ne.s32.totalorder %s93_s1, %s147_s21  ;;  %p153_p12 = scmp.lt.s32.totalorder %s147_s21, %s147_s21 }
  0x1e   :  { %v43_v4 = vsel %vm42_vm0, %v41_v3, 2147483647 }
  0x1f   :  { %v45_v5 = vshra.s32 %v43_v4, 16  ;;  %v44_v7 = vand.u32 65535, %v43_v4  ;;  %p154_p13 = por %p153_p12, %p152_p11 }
  0x21   :  { %v47_v6 = vcvt.s32.f32 %v45_v5  ;;  %v46_v8 = vcvt.s32.f32 %v44_v7  ;;  %p155_p0 = pnand %p154_p13, %p148_p10 }
  0x23   :  { %48 = vmin.xlane.f32.xlu0 %v47_v6 }
  0xac   :  { %v49_v9 = vpop.xlane.xlu0 %48 }
  0xad   :  { %vm50_vm2 = vcmp.eq.f32.partialorder %v47_v6, %v49_v9  ;;  %v55_v11 = vcvt.f32.s32 %v49_v9 }
  0xae   :  { %v51_v10 = vsel %vm50_vm2, %v46_v8, inf }
  0xaf   :  { %52 = vmin.xlane.f32.xlu0 %v51_v10  ;;  %v56_v13 = vshll.u32 %v55_v11, 16 }
 0x138   :  { %v53_v12 = vpop.xlane.xlu0 %52 }
 0x139   :  { %v54_v14 = vcvt.f32.s32 %v53_v12 }
 0x13b   :  { %v57_v15 = vadd.s32 %v56_v13, %v54_v14 }
 0x13d   :  { %v59_v16 = vadd.s32 1, %v57_v15  ;;  %vm58_vm3 = vcmp.eq.s32.totalorder %v57_v15, 7 }
 0x13f   :  { %v60_v18 = vsel %vm58_vm3, 0, %v59_v16 }
 0x140   :  { %vm67_vm5 = vcmp.eq.s32.totalorder %v39_v1, %v60_v18 }
 0x141   :  { %v71_v19 = vsel %vm67_vm5, %v36_v17, 0.0 }
 0x142   :  { %v73_v20 = vsel %vm72_vm4, %v71_v19, 0.0 }
 0x143   :  { %74 = vadd.xlane.f32.xlu1 %v73_v20 }
 0x1cc   :  { %v75_v21 = vpop.xlane.xlu1 %74 }
 0x1cd   :  { %v76_v22 = vrot.slane %v75_v21, 4 }
 0x1cf   :  { %v77_v23 = vadd.f32 %v76_v22, %v75_v21 }
 0x1d1   :  { %v78_v24 = vrot.slane %v77_v23, 2 }
 0x1d3   :  { %v79_v25 = vadd.f32 %v78_v24, %v77_v23 }
 0x1d5   :  { %v80_v26 = vrot.slane %v79_v25, 1 }
 0x1d7   :  { %v81_v27 = vadd.f32 %v80_v26, %v79_v25 }
 0x1d9   :  { %102 = vpush %v81_v27 }
 0x20a   :  { %s103_s19 = spop %102 }
 0x20b   :  { %s83_s20 = ssub.f32 0.0, %s103_s19 }
 0x20d   :  { %v84_v28 = vstv %s83_s20 }
 0x20e   :  { %85 = vst [vmem:[#allocation7] sm:$0xff] %v84_v28 }
 0x20f   :  { %158 = shalt.err (!%p155_p0)
}
 0x210   :  { %95 = dma.vmem_to_hbm [thread:$0]  %s93_s1, 128, %s202_s2, [#allocation4]  }
 0x211   :  { %171 = dma.done.wait [#allocation4], 128  }
 0x212   :  { %172 = vsyncadd [#allocation4], 4294967168 }
 0x213   :  { %99 = vsyncpa [#allocation3], 1 }
 0x214   :  { %100 = vsyncpa [#allocation6], 1 }
 0x215   :  { %101 = vsyncpa [#allocation4], 1 }

</bundles_post_ra>
